<compile_context>
chip_gen: v7x
topology: tpu7x:2x2x1
jax: 0.10.0
libtpu: 0.0.40
codegen_flags: <defaults>
</compile_context>

<pallas_src>
import math
from functools import partial

import jax
import jax.numpy as jnp
from jax import lax
from jax.experimental import pallas as pl
from jax.experimental.pallas import tpu as pltpu


def _pick_q_tile(l_q):
    # The M output puts the query tile on the lane axis, so keep TQ a multiple
    # of 128 (or fall back to the full, untiled L_Q).
    for c in (512, 256, 128):
        if l_q % c == 0:
            return c
    return l_q


# ----------------------------------------------------------------------------
# Kernel A (primary): sparsity measure  M = max_j(QK_s) - mean_j(QK_s)
#   K (full L_K rows) stays resident in VMEM; sampled rows are gathered
#   in-kernel, so HBM traffic is O(L*D) instead of O(L*U_part*D).
#   Broadcast-multiply in bf16, accumulate over D in f32.  Lane-dense output.
# ----------------------------------------------------------------------------
def _sparsity_kernel_gather(q_ref, k_ref, idx_ref, m_ref, *, L_K):
    q = q_ref[0].astype(jnp.bfloat16)               # (TQ, D)
    k = k_ref[0]                                    # (L_K, D) f32
    idx = idx_ref[...]                              # (TQ, S) int32
    ks = jnp.take(k, idx, axis=0, mode="promise_in_bounds")   # (TQ, S, D)
    prod = q[:, None, :] * ks.astype(jnp.bfloat16)
    qks = jnp.sum(prod, axis=-1, dtype=jnp.float32)            # (TQ, S)
    m = jnp.max(qks, axis=-1) - jnp.sum(qks, axis=-1) / L_K    # (TQ,)
    m_ref[...] = m.reshape(m_ref.shape)


# Fallback (same math): full Q.K^T on the MXU, sampled max / mean recovered
# with a per-row sample-count matrix.  No (L_Q, U_part, D) HBM tensor.
def _sparsity_kernel_dense(q_ref, k_ref, cnt_ref, m_ref, *, L_K):
    q = q_ref[0].astype(jnp.bfloat16)               # (TQ, D)
    k = k_ref[0].astype(jnp.bfloat16)               # (L_K, D)
    cnt = cnt_ref[...]                              # (TQ, L_K) f32, multiplicity
    s = lax.dot_general(q, k, (((1,), (1,)), ((), ())),
                        preferred_element_type=jnp.float32)   # (TQ, L_K)
    smax = jnp.max(jnp.where(cnt > 0, s, jnp.float32(-1e30)), axis=-1)
    ssum = jnp.sum(s * cnt, axis=-1)                # duplicates counted, as torch
    m_ref[...] = (smax - ssum / L_K).reshape(m_ref.shape)


def _sparsity_measure(q_bh, k_bh, index_sample):
    BH, L_Q, D = q_bh.shape
    L_K = k_bh.shape[1]
    U_part = index_sample.shape[1]
    TQ = _pick_q_tile(L_Q)
    grid = (BH, L_Q // TQ)
    out_shape = jax.ShapeDtypeStruct((BH, 1, L_Q), jnp.float32)
    out_spec = pl.BlockSpec((1, 1, TQ), lambda b, t: (b, 0, t))
    cparams = pltpu.CompilerParams(
        dimension_semantics=("parallel", "arbitrary"))
    try:
        m = pl.pallas_call(
            partial(_sparsity_kernel_gather, L_K=L_K),
            out_shape=out_shape,
            grid=grid,
            in_specs=[
                pl.BlockSpec((1, TQ, D), lambda b, t: (b, t, 0)),
                pl.BlockSpec((1, L_K, D), lambda b, t: (b, 0, 0)),   # resident
                pl.BlockSpec((TQ, U_part), lambda b, t: (t, 0)),
            ],
            out_specs=out_spec,
            compiler_params=cparams,
        )(q_bh, k_bh, index_sample)
    except Exception:
        # TODO(synk): in-kernel dynamic gather (jnp.take) not lowerable here;
        # fall back to the MXU dense-score + sample-count formulation.
        cnt = (index_sample[:, :, None]
               == jnp.arange(L_K, dtype=jnp.int32)[None, None, :])
        cnt = cnt.sum(axis=1).astype(jnp.float32)             # (L_Q, L_K)
        m = pl.pallas_call(
            partial(_sparsity_kernel_dense, L_K=L_K),
            out_shape=out_shape,
            grid=grid,
            in_specs=[
                pl.BlockSpec((1, TQ, D), lambda b, t: (b, t, 0)),
                pl.BlockSpec((1, L_K, D), lambda b, t: (b, 0, 0)),
                pl.BlockSpec((TQ, L_K), lambda b, t: (t, 0)),
            ],
            out_specs=out_spec,
            compiler_params=cparams,
        )(q_bh, k_bh, cnt)
    return m.reshape(BH, L_Q)


# ----------------------------------------------------------------------------
# Kernel B: per (b,h)
#   scores = Q_reduce @ K^T * scale, ProbMask (causal per selected row),
#   softmax, attn @ V  -> merged into the cumsum(V) initial context entirely
#   in VMEM (one-hot merge; no XLA scatter).  Primary variant also builds the
#   cumsum in-kernel (no separate HBM cumsum pass, no ctx0 input).
# ----------------------------------------------------------------------------
def _cumsum_sublane(x, n):
    # Inclusive prefix sum along axis 0 with log2(n) shifted adds
    # (shift realized by an unambiguous zero-pad + static slice + concat).
    acc = x
    s = 1
    while s < n:
        shifted = jnp.concatenate(
            [jnp.zeros((s, x.shape[1]), x.dtype), acc[: n - s, :]], axis=0)
        acc = acc + shifted
        s *= 2
    return acc


def _merge_update(idx_row, q, k, v, ctx0, *, n_top, L_K, scale):
    # scores for the selected queries: bf16 operands, f32 MXU accumulation.
    scores = lax.dot_general(
        q, k, (((1,), (1,)), ((), ())),
        preferred_element_type=jnp.float32) * scale   # (u, L_K)

    # One-hot of the selected row positions: onehot[r, t] = (r == index[t]).
    # (top_k indices are distinct, so each column has exactly one 1.)
    rows = lax.broadcasted_iota(jnp.int32, (L_K, n_top), 0)
    onehot = (rows == idx_row).astype(jnp.float32)    # (L_K, u)

    # Per-selected-row causal threshold as a (u, 1) column, recovered via a
    # tiny matmul (keeps the index operand lane-dense; no in-kernel transpose).
    col_ids = lax.broadcasted_iota(jnp.float32, (L_K, 1), 0)
    idx_col = lax.dot_general(
        onehot, col_ids, (((0,), (0,)), ((), ())),
        preferred_element_type=jnp.float32)           # (u, 1)

    # ProbMask: key j is masked for selected query t iff j > index[t].
    cols = lax.broadcasted_iota(jnp.float32, (n_top, L_K), 1)
    scores = jnp.where(cols > idx_col, jnp.float32(-1e20), scores)

    # softmax (normalization via the EUP reciprocal slot).
    smax = jnp.max(scores, axis=-1, keepdims=True)
    p = jnp.exp(scores - smax)
    attn = p * pl.reciprocal(jnp.sum(p, axis=-1, keepdims=True), approx=True)

    upd = lax.dot_general(
        attn.astype(jnp.bfloat16), v, (((1,), (0,)), ((), ())),
        preferred_element_type=jnp.float32)           # (u, D)

    # In-VMEM scatter: onehot @ upd places row t of `upd` at row index[t];
    # non-selected rows keep the initial cumsum context.
    scattered = lax.dot_general(
        onehot, upd, (((1,), (0,)), ((), ())),
        preferred_element_type=jnp.float32)           # (L_K, D)
    selected = jnp.sum(onehot, axis=-1, keepdims=True) > 0.5   # (L_K, 1)
    return jnp.where(selected, scattered, ctx0)


def _prob_attn_kernel_fused(idx_ref, qr_ref, k_ref, v_ref, out_ref, *,
                            n_top, L_K, scale):
    v32 = v_ref[0]                                    # (L_K, D) f32
    ctx0 = _cumsum_sublane(v32, L_K)                  # cumsum(V) in VMEM
    out_ref[0] = _merge_update(
        idx_ref[0], qr_ref[0].astype(jnp.bfloat16), k_ref[0].astype(jnp.bfloat16),
        v32.astype(jnp.bfloat16), ctx0, n_top=n_top, L_K=L_K, scale=scale)


def _prob_attn_kernel_ctx(idx_ref, qr_ref, k_ref, v_ref, ctx0_ref, out_ref, *,
                          n_top, L_K, scale):
    out_ref[0] = _merge_update(
        idx_ref[0], qr_ref[0].astype(jnp.bfloat16), k_ref[0].astype(jnp.bfloat16),
        v_ref[0].astype(jnp.bfloat16), ctx0_ref[0],
        n_top=n_top, L_K=L_K, scale=scale)


def _attention_update(idx_bh, qr_bh, k_bh, v_bh, scale):
    BH, L_K, D = k_bh.shape
    u = qr_bh.shape[1]
    out_shape = jax.ShapeDtypeStruct((BH, L_K, D), jnp.float32)
    out_spec = pl.BlockSpec((1, L_K, D), lambda b: (b, 0, 0))
    cparams = pltpu.CompilerParams(dimension_semantics=("parallel",))
    base_specs = [
        pl.BlockSpec((1, 1, u), lambda b: (b, 0, 0)),
        pl.BlockSpec((1, u, D), lambda b: (b, 0, 0)),
        pl.BlockSpec((1, L_K, D), lambda b: (b, 0, 0)),
        pl.BlockSpec((1, L_K, D), lambda b: (b, 0, 0)),
    ]
    try:
        return pl.pallas_call(
            partial(_prob_attn_kernel_fused, n_top=u, L_K=L_K, scale=scale),
            out_shape=out_shape, grid=(BH,),
            in_specs=base_specs, out_specs=out_spec,
            compiler_params=cparams,
        )(idx_bh, qr_bh, k_bh, v_bh)
    except Exception:
        # TODO(synk): in-kernel sublane prefix-sum not lowerable here; fall
        # back to the proven path (cumsum in plain JAX, merged in-kernel).
        ctx0_bh = jnp.cumsum(v_bh, axis=1)
        return pl.pallas_call(
            partial(_prob_attn_kernel_ctx, n_top=u, L_K=L_K, scale=scale),
            out_shape=out_shape, grid=(BH,),
            in_specs=base_specs + [pl.BlockSpec((1, L_K, D), lambda b: (b, 0, 0))],
            out_specs=out_spec,
            compiler_params=cparams,
        )(idx_bh, qr_bh, k_bh, v_bh, ctx0_bh)


# ----------------------------------------------------------------------------
# Wrapper: full ProbAttention forward (mask_flag=True, top_keys=False)
# ----------------------------------------------------------------------------
def prob_attention(queries, keys, values, sample_rng, factor=5, scale=None):
    B, L_Q, H, D = queries.shape
    _, L_K, _, _ = keys.shape
    assert L_Q == L_K, "mask_flag=True path requires L_Q == L_K"

    # (B, L, H, D) -> (B, H, L, D).  Q is only ever a matmul/multiply operand,
    # so store it bf16 (halves its transpose write + kernel read).
    q = jnp.transpose(queries, (0, 2, 1, 3)).astype(jnp.bfloat16)
    k = jnp.transpose(keys, (0, 2, 1, 3)).astype(jnp.float32)
    v = jnp.transpose(values, (0, 2, 1, 3)).astype(jnp.float32)

    U_part = min(int(factor * math.ceil(math.log(L_K))), L_K)    # sample_k
    u = min(int(factor * math.ceil(math.log(L_Q))), L_Q)         # n_top
    scale = scale if scale is not None else 1.0 / math.sqrt(D)

    BH = B * H
    # torch.randint(L_K, (L_Q, sample_k)) analogue (shared across b,h)
    index_sample = jax.random.randint(sample_rng, (L_Q, U_part), 0, L_K,
                                      dtype=jnp.int32)

    q_bh = q.reshape(BH, L_Q, D)
    k_bh = k.reshape(BH, L_K, D)
    v_bh = v.reshape(BH, L_K, D)

    # ---- Kernel A: sparsity measure M ----
    M = _sparsity_measure(q_bh, k_bh, index_sample).reshape(B, H, L_Q)

    # ---- top-k query selection (glue) ----
    # TODO(synk): top_k + the tiny u-row gather stay in plain JAX.
    M_top = lax.top_k(M, u)[1].astype(jnp.int32)                  # (B, H, u)
    Q_reduce = jnp.take_along_axis(q, M_top[..., None], axis=2)   # (B, H, u, D)

    qr_bh = Q_reduce.reshape(BH, u, D)
    idx_bh = M_top.reshape(BH, 1, u)

    # ---- Kernel B: cumsum(V) init + masked softmax attention + in-VMEM merge
    ctx_bh = _attention_update(idx_bh, qr_bh, k_bh, v_bh, scale)

    context = ctx_bh.reshape(B, H, L_Q, D)
    # output_attention=False -> attn is None
    return context, None, M, M_top, index_sample


# ----------------------------------------------------------------------------
# Pure-JAX f32 reference (mirrors the PyTorch semantics), for a sanity check.
# Uses the same sampled indices and the kernel's selected queries.
# ----------------------------------------------------------------------------
def _reference(queries, keys, values, index_sample, M_top, scale=None):
    B, L_Q, H, D = queries.shape
    L_K = keys.shape[1]
    q = jnp.transpose(queries, (0, 2, 1, 3)).astype(jnp.float32)
    k = jnp.transpose(keys, (0, 2, 1, 3)).astype(jnp.float32)
    v = jnp.transpose(values, (0, 2, 1, 3)).astype(jnp.float32)
    scale = scale if scale is not None else 1.0 / math.sqrt(D)

    K_sample = k[:, :, index_sample, :]
    qks = jnp.einsum('bhld,bhlsd->bhls', q, K_sample)
    M = qks.max(-1) - qks.sum(-1) / L_K

    Q_reduce = jnp.take_along_axis(q, M_top[..., None], axis=2)
    scores = jnp.einsum('bhud,bhkd->bhuk', Q_reduce, k) * scale
    mask = jnp.arange(L_K)[None, None, None, :] > M_top[..., None]
    scores = jnp.where(mask, -1e20, scores)
    attn = jax.nn.softmax(scores, axis=-1)
    upd = jnp.einsum('bhuk,bhkd->bhud', attn, v)
    ctx = jnp.cumsum(v, axis=2)
    ctx = ctx.at[jnp.arange(B)[:, None, None],
                 jnp.arange(H)[None, :, None],
                 M_top, :].set(upd)
    return ctx, M


if __name__ == "__main__":
    B, L, H, D = 2, 128, 2, 32     # small but non-degenerate (u = 25 < L)
    key = jax.random.PRNGKey(0)
    kq, kk, kv, ks = jax.random.split(key, 4)
    queries = jax.random.normal(kq, (B, L, H, D), dtype=jnp.float32)
    keys_ = jax.random.normal(kk, (B, L, H, D), dtype=jnp.float32)
    values = jax.random.normal(kv, (B, L, H, D), dtype=jnp.float32)

    context, attn, M_kernel, M_top, index_sample = prob_attention(
        queries, keys_, values, ks)
    context = jax.block_until_ready(context)

    ctx_ref, M_ref = _reference(queries, keys_, values, index_sample, M_top)

    assert context.shape == (B, H, L, D)
    assert attn is None
    # bf16 operands / f32 accumulation in the kernels vs. f32 reference.
    assert jnp.allclose(M_kernel, M_ref, atol=5e-2, rtol=5e-2)
    assert jnp.allclose(context, ctx_ref, atol=5e-2, rtol=5e-2)
    print("KERNEL_OK")
</pallas_src>

<mosaic_0001>
module attributes {stable_mosaic.version = 11 : i64} {
  func.func @_sparsity_kernel_dense(%arg0: i32, %arg1: i32, %arg2: memref<1x128x32xbf16, #tpu.memory_space<vmem>>, %arg3: memref<1x128x32xf32, #tpu.memory_space<vmem>>, %arg4: memref<128x128xf32, #tpu.memory_space<vmem>>, %arg5: memref<1x1x128xf32, #tpu.memory_space<vmem>>) attributes {dimension_semantics = [#tpu.dimension_semantics<parallel>, #tpu.dimension_semantics<arbitrary>], iteration_bounds = array<i64: 4, 1>, scalar_prefetch = 0 : i64, scratch_operands = 0 : i64, tpu.core_type = #tpu.core_type<tc>, window_params = [{transform_indices = @transform_0, window_bounds = array<i64: 1, 128, 32>}, {transform_indices = @transform_1, window_bounds = array<i64: 1, 128, 32>}, {transform_indices = @transform_2, window_bounds = array<i64: 128, 128>}, {transform_indices = @transform_3, window_bounds = array<i64: 1, 1, 128>}]} {
    %c0 = arith.constant 0 : index
    %c0_0 = arith.constant 0 : index
    %c0_1 = arith.constant 0 : index
    %0 = vector.load %arg2[%c0, %c0_0, %c0_1] : memref<1x128x32xbf16, #tpu.memory_space<vmem>>, vector<1x128x32xbf16>
    %1 = vector.shape_cast %0 : vector<1x128x32xbf16> to vector<128x32xbf16>
    %c0_2 = arith.constant 0 : index
    %c0_3 = arith.constant 0 : index
    %c0_4 = arith.constant 0 : index
    %2 = vector.load %arg3[%c0_2, %c0_3, %c0_4] : memref<1x128x32xf32, #tpu.memory_space<vmem>>, vector<1x128x32xf32>
    %3 = vector.shape_cast %2 : vector<1x128x32xf32> to vector<128x32xf32>
    %4 = arith.truncf %3 : vector<128x32xf32> to vector<128x32xbf16>
    %c0_5 = arith.constant 0 : index
    %c0_6 = arith.constant 0 : index
    %5 = vector.load %arg4[%c0_5, %c0_6] : memref<128x128xf32, #tpu.memory_space<vmem>>, vector<128x128xf32>
    %cst = arith.constant dense<0.000000e+00> : vector<128x128xf32>
    %6 = tpu.matmul %1, %4, %cst {dimension_numbers = #tpu.dot_dimension_numbers<[1], [1], [0], [0], [0, 0, 1, 0], [], []>} : vector<128x32xbf16>, vector<128x32xbf16>, vector<128x128xf32> -> vector<128x128xf32>
    %cst_7 = arith.constant 0.000000e+00 : f32
    %7 = vector.broadcast %cst_7 : f32 to vector<128x128xf32>
    %8 = arith.cmpf ogt, %5, %7 : vector<128x128xf32>
    %cst_8 = arith.constant -1.000000e+30 : f32
    %9 = vector.broadcast %cst_8 : f32 to vector<128x128xf32>
    %10 = arith.select %8, %6, %9 : vector<128x128xi1>, vector<128x128xf32>
    %cst_9 = arith.constant dense<0xFF800000> : vector<128xf32>
    %11 = vector.multi_reduction <maximumf>, %10, %cst_9 [1] : vector<128x128xf32> to vector<128xf32>
    %12 = arith.mulf %6, %5 : vector<128x128xf32>
    %cst_10 = arith.constant dense<0.000000e+00> : vector<128xf32>
    %13 = vector.multi_reduction <add>, %12, %cst_10 [1] : vector<128x128xf32> to vector<128xf32>
    %cst_11 = arith.constant 1.280000e+02 : f32
    %14 = vector.broadcast %cst_11 : f32 to vector<128xf32>
    %15 = arith.divf %13, %14 : vector<128xf32>
    %16 = arith.subf %11, %15 : vector<128xf32>
    %17 = vector.shape_cast %16 : vector<128xf32> to vector<1x1x128xf32>
    %c0_12 = arith.constant 0 : index
    %c0_13 = arith.constant 0 : index
    %c0_14 = arith.constant 0 : index
    %18 = vector.load %arg5[%c0_12, %c0_13, %c0_14] : memref<1x1x128xf32, #tpu.memory_space<vmem>>, vector<1x1x128xf32>
    tpu.vector_store %arg5[%c0_12, %c0_13, %c0_14], %17 {strides = array<i32>} : memref<1x1x128xf32, #tpu.memory_space<vmem>>, vector<1x1x128xf32>,
    return
  }
  func.func @transform_0(%arg0: i32, %arg1: i32) -> (i32, i32, i32) {
    %c0_i32 = arith.constant 0 : i32
    %c0_i32_0 = arith.constant 0 : i32
    return %arg0, %arg1, %c0_i32 : i32, i32, i32
  }
  func.func @transform_1(%arg0: i32, %arg1: i32) -> (i32, i32, i32) {
    %c0_i32 = arith.constant 0 : i32
    %c0_i32_0 = arith.constant 0 : i32
    %c0_i32_1 = arith.constant 0 : i32
    return %arg0, %c0_i32, %c0_i32_0 : i32, i32, i32
  }
  func.func @transform_2(%arg0: i32, %arg1: i32) -> (i32, i32) {
    %c0_i32 = arith.constant 0 : i32
    %c0_i32_0 = arith.constant 0 : i32
    return %arg1, %c0_i32 : i32, i32
  }
  func.func @transform_3(%arg0: i32, %arg1: i32) -> (i32, i32, i32) {
    %c0_i32 = arith.constant 0 : i32
    %c0_i32_0 = arith.constant 0 : i32
    return %arg0, %c0_i32, %arg1 : i32, i32, i32
  }
}

</mosaic_0001>

<bundles_post_ra>
// kernel: tpu_custom_call.1
= control target key start
LH: loop header
LB: loop body
LE: loop exit
PB: predicated region body
PF: predicated region fallthrough
CT: control target
= control target key end

     0   :  { %8 = vsyncpa [#allocation3], 0  ;;  %s1503_s0 = inlined_call_operand.vmem [shape: bf16[4,128,32], index: 0, kind: input, shape index: {}]   ;;  %s1504_s1 = inlined_call_operand.vmem [shape: f32[4,128,32], index: 1, kind: input, shape index: {}]   ;;  %s1505_s2 = inlined_call_operand.vmem [shape: f32[128,128], index: 2, kind: input, shape index: {}]   ;;  %s1506_s3 = inlined_call_operand.hbm [shape: f32[4,1,128], index: 3, kind: output, shape index: {}]  }
   0x1   :  { %10 = vsyncpa [#allocation3 + $0x1], 0  ;;  %s1143_s12 = smov 0   ;;  %s1145_s13 = smov 0  }
   0x2   :  { %s1147_s14 = smov 0   ;;  %s1149_s15 = smov 0  }
   0x3   :  { %s1151_s16 = smov 0   ;;  %s1153_s17 = smov 0  }
   0x4 LB: > { %s868_s18 = sadd.s32 4294967295, %s1120_s17   ;;  %s869_s19 = sadd.s32 4294967294, %s1120_s17   ;;  %s1120_s17 = sphi %s1153_s17, %s16_s17   ;;  %s1116_s16 = sphi %s1151_s16, %s1513_s16   ;;  %s1112_s15 = sphi %s1149_s15, %s1512_s15   ;;  %s1108_s14 = sphi %s1147_s14, %s1511_s14   ;;  %s1104_s13 = sphi %s1145_s13, %s1510_s13   ;;  %s1100_s12 = sphi %s1143_s12, %s1509_s12  }
   0x5   : > { %s28_s20 = sadd.s32 1, %s1116_s16  ;;  %s117_s21 = sadd.s32 1, %s1108_s14 }
   0x6   : > { %p30_p0 = scmp.ge.s32.totalorder %s28_s20, 4  ;;  %p127_p1 = scmp.ne.s32.totalorder %s1108_s14, %s1104_s13 }
   0x7   : > { %p128_p2 = scmp.eq.s32.totalorder %s868_s18, 3  ;;  %p133_p3 = scmp.ne.s32.totalorder %s1104_s13, %s1100_s12 }
   0x8   : > { %s1515_s20 = smov (%p30_p0, %s28_s20), 0  ;;  %p134_p5 = scmp.eq.s32.totalorder %s869_s19, 3 }
   0x9   : > { %p1183_p4 = por %p128_p2, %p127_p1  ;;  %s112_s23 = ssub.s32 %s1116_s16, %s1515_s20 }
   0xa   : > { %p873_p6 = scmp.ge.s32.totalorder %s1120_s17, 1  ;;  %p115_p7 = scmp.eq.s32.totalorder %s112_s23, 0 }
   0xb   : > { %p1190_p8 = por %p134_p5, %p133_p3  ;;  %p182_p9 = scmp.lt.s32.totalorder %s1120_s17, 5 }
   0xc   : > { %s1196_s25 = scalar_select %p115_p7, %s1108_s14, %s117_s21  }
   0xd   : > { %p183_p10 = pnand %p873_p6, %p182_p9 }
   0xe   : > { %p220_p11 = scmp.lt.s32.totalorder (!%p183_p10), %s1112_s15, 3  ;;  %vm337_vm0 = vcmask (!%p183_p10), 261120   ;;  %v283_v40 = vld [vmem:[%s1505_s2 + $0x10] sm:$0xff] (!%p183_p10)  ;;  %v281_v44 = vld [vmem:[%s1505_s2] sm:$0xff] (!%p183_p10)  ;;  %s217_s6 = sand.u32 (!%p183_p10), 1, %s1104_s13  }
   0xf   : > { %186 = sbr.rel (%p183_p10) target bundleno = 528 (0x210), region = 32  ;;  %v291_v41 = vld [vmem:[%s1505_s2 + $0x50] sm:$0xff] (!%p183_p10)  ;;  %vm485_vm1 = vcmp.gt.f32.partialorder (!%p183_p10), %v283_v40, 0.0  ;;  %vm483_vm3 = vcmp.gt.f32.partialorder (!%p183_p10), %v281_v44, 0.0  ;;  %v289_v54 = vld [vmem:[%s1505_s2 + $0x40] sm:$0xff] (!%p183_p10)  ;;  %s218_s8 = scalar_lea.vmem (!%p183_p10), [#allocation2], %s217_s6 }
  0x10   : > { %vm493_vm2 = vcmp.gt.f32.partialorder (!%p183_p10), %v291_v41, 0.0  ;;  %vm491_vm4 = vcmp.gt.f32.partialorder (!%p183_p10), %v289_v54, 0.0  ;;  %s771_s9 = sshll.u32 (!%p183_p10), %s218_s8, 4  ;;  %s1122_s21 = smov (!%p183_p10), [#allocation2]   ;;  %s1456_s9 = int_to_ptr.vmem [resolvable:$true] %s771_s9 }
  0x11   : > { %s1042_s19 = scalar_lea.vmem (!%p183_p10), %s1456_s9, 16  ;;  %s1046_s23 = sshll.u32 (!%p183_p10), %s1122_s21, 4  ;;  %s1047_s23 = int_to_ptr.vmem [resolvable:$false] %s1046_s23 }
  0x12   : > { %p1043_p12 = scmp.ne.s32.totalorder (!%p183_p10), %s1456_s9, %s1042_s19  ;;  %p1049_p1 = scmp.lt.s32.totalorder (!%p183_p10), %s1456_s9, %s1047_s23 }
  0x14   : > { %p1044_p13 = pnand (!%p183_p10), %p1043_p12, %p1183_p4 }
  0x16   : > { %s221_s26 = scalar_select %p220_p11, %s1112_s15, 3 }
  0x17   : > { %p1045_p0 = pneg %p1044_p13 }
  0x18   : > { %s898_s27 = sshll.u32 %s221_s26, 7  ;;  %s897_s4 = sshll.u32 %s221_s26, 6 }
  0x19   : > { %s1203_s30 = scalar_lea.vmem %s1504_s1, %s898_s27  ;;  %s1215_s7 = scalar_lea.vmem %s1503_s0, %s897_s4 }
  0x1a   : > { %v257_v0 = vld [vmem:[%s1203_s30] sm:$0xff]  ;;  %v258_v1 = vld [vmem:[%s1203_s30 + $0x8] sm:$0xff]  ;;  %v259_v2 = vld [vmem:[%s1203_s30 + $0x10] sm:$0xff]  ;;  %s1048_s26 = scalar_lea.vmem %s1047_s23, 32 }
  0x1b   : > { %v273_v3 = vpack.c.bf16 %v258_v1, %v257_v0  ;;  %v260_v4 = vld [vmem:[%s1203_s30 + $0x18] sm:$0xff]  ;;  %v261_v7 = vld [vmem:[%s1203_s30 + $0x20] sm:$0xff]  ;;  %v262_v8 = vld [vmem:[%s1203_s30 + $0x28] sm:$0xff]  ;;  %p1050_p2 = scmp.lt.s32.totalorder %s1048_s26, %s1042_s19 }
  0x1c   : > { %v274_v5 = vpack.c.bf16 %v260_v4, %v259_v2  ;;  %v1034_v9 = vld [vmem:[%s1215_s7] sm:$0xff]   ;;  %v275_v12 = vpack.c.bf16 %v262_v8, %v261_v7  ;;  %v263_v13 = vld [vmem:[%s1203_s30 + $0x30] sm:$0xff]  ;;  %v264_v14 = vld [vmem:[%s1203_s30 + $0x38] sm:$0xff] }
  0x1d   : > { %963 = vmatprep.subr.msk.bf16.mxu0 %vm337_vm0, %v273_v3  ;;  %964 = vmatprep.subr.msk.bf16.mxu1 %vm337_vm0, %v273_v3  ;;  %v363_v6 = vsel %vm337_vm0, %v273_v3, 0  ;;  %v1036_v10 = vld [vmem:[%s1215_s7 + $0x20] sm:$0xff]   ;;  %v276_v16 = vpack.c.bf16 %v264_v14, %v263_v13  ;;  %v266_v18 = vld [vmem:[%s1203_s30 + $0x48] sm:$0xff]  ;;  %v267_v21 = vld [vmem:[%s1203_s30 + $0x50] sm:$0xff]  ;;  %p1051_p3 = por %p1050_p2, %p1049_p1 }
  0x1e   : > { %916 = vmatpush3.bf16.xpose.msra.mxu0 %v363_v6  ;;  %955 = vmatpush3.bf16.xpose.msra.mxu1 %v363_v6  ;;  %v366_v11 = vsel %vm337_vm0, %v274_v5, 0  ;;  %v369_v15 = vsel %vm337_vm0, %v275_v12, 0  ;;  %v265_v17 = vld [vmem:[%s1203_s30 + $0x40] sm:$0xff]  ;;  %v268_v22 = vld [vmem:[%s1203_s30 + $0x58] sm:$0xff]  ;;  %v270_v26 = vld [vmem:[%s1203_s30 + $0x68] sm:$0xff] }
  0x1f   : > { %965 = vmatprep.subr.msk.bf16.mxu0 %vm337_vm0, %v274_v5  ;;  %966 = vmatprep.subr.msk.bf16.mxu1 %vm337_vm0, %v274_v5  ;;  %v372_v19 = vsel %vm337_vm0, %v276_v16, 0  ;;  %v277_v20 = vpack.c.bf16 %v266_v18, %v265_v17  ;;  %v278_v24 = vpack.c.bf16 %v268_v22, %v267_v21  ;;  %v269_v25 = vld [vmem:[%s1203_s30 + $0x60] sm:$0xff]  ;;  %v271_v29 = vld [vmem:[%s1203_s30 + $0x70] sm:$0xff]  ;;  %v272_v30 = vld [vmem:[%s1203_s30 + $0x78] sm:$0xff]  ;;  %p1052_p5 = pnand %p1051_p3, %p1045_p0 }
  0x20   : > { %931 = vmatprep.mubr.msk.bf16.mxu0 %vm337_vm0, %v1034_v9  ;;  %939 = vmatprep.mubr.msk.bf16.mxu1 %vm337_vm0, %v1036_v10  ;;  %v279_v28 = vpack.c.bf16 %v270_v26, %v269_v25  ;;  %v280_v32 = vpack.c.bf16 %v272_v30, %v271_v29  ;;  %v1035_v34 = vld [vmem:[%s1215_s7 + $0x8] sm:$0xff]   ;;  %v1038_v36 = vld [vmem:[%s1215_s7 + $0x10] sm:$0xff]   ;;  %v1039_v38 = vld [vmem:[%s1215_s7 + $0x18] sm:$0xff]  }
  0x21   : > { %v375_v23 = vsel %vm337_vm0, %v277_v20, 0  ;;  %v378_v27 = vsel %vm337_vm0, %v278_v24, 0  ;;  %v1037_v35 = vld [vmem:[%s1215_s7 + $0x28] sm:$0xff]   ;;  %v1040_v37 = vld [vmem:[%s1215_s7 + $0x30] sm:$0xff]   ;;  %v1041_v39 = vld [vmem:[%s1215_s7 + $0x38] sm:$0xff]   ;;  %s894_s7 = sshll.u32 %s1112_s15, 4 }
  0x22   : > { %v381_v31 = vsel %vm337_vm0, %v279_v28, 0  ;;  %v384_v33 = vsel %vm337_vm0, %v280_v32, 0  ;;  %v284_v0 = vld [vmem:[%s1505_s2 + $0x18] sm:$0xff]  ;;  %v282_v8 = vld [vmem:[%s1505_s2 + $0x8] sm:$0xff]  ;;  %v285_v17 = vld [vmem:[%s1505_s2 + $0x20] sm:$0xff]  ;;  %s1454_s18 = scalar_lea.hbm %s1506_s3, %s894_s7  ;;  %s758_s15 = scalar_lea.sflag [#allocation3], %s217_s6 }
  0x23   : > { %vm486_vm5 = vcmp.gt.f32.partialorder %v284_v0, 0.0  ;;  %v292_v5 = vld [vmem:[%s1505_s2 + $0x58] sm:$0xff]  ;;  %vm484_vm7 = vcmp.gt.f32.partialorder %v282_v8, 0.0  ;;  %vm487_vm10 = vcmp.gt.f32.partialorder %v285_v17, 0.0 }
  0x24   : > { %vm494_vm6 = vcmp.gt.f32.partialorder %v292_v5, 0.0 }
  0x26   : > { %918 = vmatpush3.bf16.xpose.msra.mxu0 %v366_v11  ;;  %956 = vmatpush3.bf16.xpose.msra.mxu1 %v366_v11  ;;  %v290_v11 = vld [vmem:[%s1505_s2 + $0x48] sm:$0xff] }
  0x27   : > { %967 = vmatprep.subr.msk.bf16.mxu0 %vm337_vm0, %v275_v12  ;;  %968 = vmatprep.subr.msk.bf16.mxu1 %vm337_vm0, %v275_v12  ;;  %v287_v12 = vld [vmem:[%s1505_s2 + $0x30] sm:$0xff]  ;;  %vm492_vm8 = vcmp.gt.f32.partialorder %v290_v11, 0.0 }
  0x28   : > { %vm489_vm9 = vcmp.gt.f32.partialorder %v287_v12, 0.0 }
  0x2e   : > { %920 = vmatpush3.bf16.xpose.msra.mxu0 %v369_v15  ;;  %957 = vmatpush3.bf16.xpose.msra.mxu1 %v369_v15 }
  0x2f   : > { %969 = vmatprep.subr.msk.bf16.mxu0 %vm337_vm0, %v276_v16  ;;  %970 = vmatprep.subr.msk.bf16.mxu1 %vm337_vm0, %v276_v16 }
  0x36   : > { %922 = vmatpush3.bf16.xpose.msra.mxu0 %v372_v19  ;;  %958 = vmatpush3.bf16.xpose.msra.mxu1 %v372_v19  ;;  %v293_v19 = vld [vmem:[%s1505_s2 + $0x60] sm:$0xff] }
  0x37   : > { %971 = vmatprep.subr.msk.bf16.mxu0 %vm337_vm0, %v277_v20  ;;  %972 = vmatprep.subr.msk.bf16.mxu1 %vm337_vm0, %v277_v20  ;;  %vm495_vm13 = vcmp.gt.f32.partialorder %v293_v19, 0.0 }
  0x3e   : > { %924 = vmatpush3.bf16.xpose.msra.mxu0 %v375_v23  ;;  %959 = vmatpush3.bf16.xpose.msra.mxu1 %v375_v23  ;;  %v295_v23 = vld [vmem:[%s1505_s2 + $0x70] sm:$0xff] }
  0x3f   : > { %973 = vmatprep.subr.msk.bf16.mxu0 %vm337_vm0, %v278_v24  ;;  %974 = vmatprep.subr.msk.bf16.mxu1 %vm337_vm0, %v278_v24  ;;  %v288_v24 = vld [vmem:[%s1505_s2 + $0x38] sm:$0xff]  ;;  %vm497_vm15 = vcmp.gt.f32.partialorder %v295_v23, 0.0 }
  0x40   : > { %vm490_vm11 = vcmp.gt.f32.partialorder %v288_v24, 0.0 }
  0x46   : > { %926 = vmatpush3.bf16.xpose.msra.mxu0 %v378_v27  ;;  %960 = vmatpush3.bf16.xpose.msra.mxu1 %v378_v27  ;;  %v286_v27 = vld [vmem:[%s1505_s2 + $0x28] sm:$0xff] }
  0x47   : > { %975 = vmatprep.subr.msk.bf16.mxu0 %vm337_vm0, %v279_v28  ;;  %976 = vmatprep.subr.msk.bf16.mxu1 %vm337_vm0, %v279_v28  ;;  %vm488_vm12 = vcmp.gt.f32.partialorder %v286_v27, 0.0 }
  0x4e   : > { %928 = vmatpush3.bf16.xpose.msra.mxu0 %v381_v31  ;;  %961 = vmatpush3.bf16.xpose.msra.mxu1 %v381_v31 }
  0x4f   : > { %977 = vmatprep.subr.msk.bf16.mxu0 %vm337_vm0, %v280_v32  ;;  %978 = vmatprep.subr.msk.bf16.mxu1 %vm337_vm0, %v280_v32  ;;  %v296_v32 = vld [vmem:[%s1505_s2 + $0x78] sm:$0xff] }
  0x56   : > { %930 = vmatpush3.bf16.xpose.msra.mxu0 %v384_v33  ;;  %962 = vmatpush3.bf16.xpose.msra.mxu1 %v384_v33  ;;  %v294_v33 = vld [vmem:[%s1505_s2 + $0x68] sm:$0xff] }
  0x57   : > { %vm496_vm14 = vcmp.gt.f32.partialorder %v294_v33, 0.0 }
  0x5d   : > { %932 = vmatmul.mubr.msk.bf16.vlgmr.msra.gmra.mrb[0].mxu0 %vm337_vm0, %v1035_v34  ;;  %940 = vmatmul.mubr.msk.bf16.vlgmr.msra.gmra.mrb[0].mxu1 %vm337_vm0, %v1037_v35 }
  0x5e   : > { %935 = vmatprep.mubr.msk.bf16.mxu0 %vm337_vm0, %v1038_v36  ;;  %943 = vmatprep.mubr.msk.bf16.mxu1 %vm337_vm0, %v1040_v37 }
  0x65   : > { %936 = vmatmul.mubr.msk.bf16.gmra.mrb[4].mxu0 %vm337_vm0, %v1039_v38  ;;  %944 = vmatmul.mubr.msk.bf16.gmra.mrb[4].mxu1 %vm337_vm0, %v1041_v39  ;;  %vm498_vm0 = vcmp.gt.f32.partialorder %v296_v32, 0.0 }
 0x130   : > { %v933_v42 = vpop.f32.mrb[0].mxu0  ;;  %v941_v43 = vpop.f32.mrb[0].mxu1 }
 0x131   : > { %v420_v45 = vpop.f32.mrb[1].mxu0  ;;  %v452_v46 = vpop.f32.mrb[1].mxu1  ;;  %v501_v47 = vsel %vm485_vm1, %v933_v42, -1e+30  ;;  %v549_v48 = vmul.f32 %v933_v42, %v283_v40  ;;  %v509_v53 = vsel %vm493_vm2, %v941_v43, -1e+30  ;;  %v557_v59 = vmul.f32 %v941_v43, %v291_v41 }
 0x132   : > { %519 = vmax.xlane.f32.xlu0 %v501_v47  ;;  %v934_v49 = vpop.f32.mrb[2].mxu0  ;;  %v942_v50 = vpop.f32.mrb[2].mxu1  ;;  %v499_v55 = vsel %vm483_vm3, %v420_v45, -1e+30  ;;  %v507_v58 = vsel %vm491_vm4, %v452_v46, -1e+30  ;;  %v547_v3 = vmul.f32 %v420_v45, %v281_v44  ;;  %v555_v4 = vmul.f32 %v452_v46, %v289_v54 }
 0x133   : > { %567 = vadd.xlane.f32.xlu1 %v549_v48  ;;  %v423_v51 = vpop.f32.mrb[3].mxu0  ;;  %v455_v52 = vpop.f32.mrb[3].mxu1  ;;  %v502_v6 = vsel %vm486_vm5, %v934_v49, -1e+30  ;;  %v550_v7 = vmul.f32 %v934_v49, %v284_v0  ;;  %v510_v9 = vsel %vm494_vm6, %v942_v50, -1e+30  ;;  %v558_v10 = vmul.f32 %v942_v50, %v292_v5 }
 0x134   : > { %v500_v13 = vsel %vm484_vm7, %v423_v51, -1e+30  ;;  %v556_v14 = vmul.f32 %v455_v52, %v290_v11  ;;  %v508_v16 = vsel %vm492_vm8, %v455_v52, -1e+30  ;;  %v548_v18 = vmul.f32 %v423_v51, %v282_v8 }
 0x135   : > { %v644_v54 = vlaneseq  ;;  %vm655_vm1 = vcmask 130112   ;;  %vm662_vm2 = vcmask 195712   ;;  %vm669_vm3 = vcmask 261312  }
 0x136   : > { %535 = vmax.xlane.f32.xlu0 %v509_v53  ;;  %vm676_vm4 = vcmask 326912   ;;  %vm683_vm5 = vcmask 392512   ;;  %vm690_vm6 = vcmask 458112   ;;  %vm697_vm7 = vcmask 523712  }
 0x137   : > { %515 = vmax.xlane.f32.xlu1 %v499_v55  ;;  %vm704_vm8 = vcmask 589312  }
 0x138   : > { %v937_v56 = vpop.f32.mrb[4].mxu0  ;;  %v1278_v57 = vpop.f32.mrb[4].mxu1 }
 0x139   : > { %v436_v60 = vpop.f32.mrb[5].mxu0  ;;  %v1280_v61 = vpop.f32.mrb[5].mxu1  ;;  %v553_v15 = vmul.f32 %v937_v56, %v287_v12  ;;  %v505_v22 = vsel %vm489_vm9, %v937_v56, -1e+30  ;;  %v561_v26 = vmul.f32 %v1278_v57, %v295_v23  ;;  %v513_v38 = vsel %vm497_vm15, %v1278_v57, -1e+30 }
 0x13a   : > { %531 = vmax.xlane.f32.xlu0 %v507_v58  ;;  %v938_v62 = vpop.f32.mrb[6].mxu0  ;;  %v1282_v63 = vpop.f32.mrb[6].mxu1  ;;  %v551_v20 = vmul.f32 %v436_v60, %v285_v17  ;;  %v559_v21 = vmul.f32 %v1280_v61, %v293_v19  ;;  %v503_v25 = vsel %vm487_vm10, %v436_v60, -1e+30  ;;  %v511_v34 = vsel %vm495_vm13, %v1280_v61, -1e+30 }
 0x13b   : > { %583 = vadd.xlane.f32.xlu1 %v557_v59  ;;  %v439_v1 = vpop.f32.mrb[7].mxu0  ;;  %v1287_v2 = vpop.f32.mrb[7].mxu1  ;;  %v506_v28 = vsel %vm490_vm11, %v938_v62, -1e+30  ;;  %v554_v29 = vmul.f32 %v938_v62, %v288_v24  ;;  %v562_v35 = vmul.f32 %v1282_v63, %v296_v32  ;;  %v514_v39 = vsel %vm498_vm0, %v1282_v63, -1e+30 }
 0x13c   : > { %v552_v30 = vmul.f32 %v439_v1, %v286_v27  ;;  %v504_v31 = vsel %vm488_vm12, %v439_v1, -1e+30  ;;  %v560_v36 = vmul.f32 %v1287_v2, %v294_v33  ;;  %v512_v37 = vsel %vm496_vm14, %v1287_v2, -1e+30 }
 0x13d   : > { %v1350_v57 = vand.u32 127, %v644_v54  ;;  %v1352_v60 = vshrl.u32 %v644_v54, 7  ;;  %vm711_vm9 = vcmask 654912   ;;  %vm718_vm10 = vcmask 720512  }
 0x13e   : > { %563 = vadd.xlane.f32.xlu0 %v547_v3  ;;  %vm725_vm11 = vcmask 786112   ;;  %vm732_vm12 = vcmask 851712   ;;  %vm739_vm13 = vcmask 917312   ;;  %vm746_vm14 = vcmask 982912  }
 0x13f   : > { %579 = vadd.xlane.f32.xlu1 %v555_v4  ;;  %v657_v61 = vadd.s32 4294967280, %v1350_v57  ;;  %v650_v62 = vadd.s32 4294967288, %v1350_v57  ;;  %v1359_v1 = vadd.s32 4294967216, %v1350_v57  ;;  %v1364_v4 = vadd.s32 4294967232, %v1350_v57 }
 0x140   : > { %v664_v5 = vadd.s32 4294967272, %v1350_v57  ;;  %v1376_v11 = vadd.s32 4294967248, %v1350_v57  ;;  %v734_v54 = vadd.s32 4294967192, %v1350_v57  ;;  %vm753_vm15 = vcmask 1048512  }
 0x141   : > { %v660_v8 = vsub.s32 %v657_v61, %v1352_v60  ;;  %v702_v19 = vsub.s32 %v1364_v4, %v1352_v60 }
 0x142   : > { %521 = vmax.xlane.f32.xlu0 %v502_v6  ;;  %v1368_v6 = vadd.s32 4294967208, %v1350_v57 }
 0x143   : > { %569 = vadd.xlane.f32.xlu1 %v550_v7  ;;  %v1371_v7 = vadd.s32 4294967224, %v1350_v57 }
 0x145   : > { %v709_v23 = vsub.s32 %v1371_v7, %v1352_v60 }
 0x146   : > { %537 = vmax.xlane.f32.xlu0 %v510_v9  ;;  %v653_v9 = vsub.s32 %v650_v62, %v1352_v60 }
 0x147   : > { %585 = vadd.xlane.f32.xlu1 %v558_v10 }
 0x14a   : > { %517 = vmax.xlane.f32.xlu0 %v500_v13 }
 0x14b   : > { %581 = vadd.xlane.f32.xlu1 %v556_v14  ;;  %v716_v14 = vsub.s32 %v1359_v1, %v1352_v60 }
 0x14e   : > { %533 = vmax.xlane.f32.xlu0 %v508_v16  ;;  %v671_v16 = vadd.s32 4294967264, %v1350_v57 }
 0x14f   : > { %575 = vadd.xlane.f32.xlu1 %v553_v15  ;;  %v648_v15 = vsub.s32 %v1350_v57, %v1352_v60 }
 0x152   : > { %565 = vadd.xlane.f32.xlu0 %v548_v18 }
 0x153   : > { %571 = vadd.xlane.f32.xlu1 %v551_v20  ;;  %v667_v20 = vsub.s32 %v664_v5, %v1352_v60 }
 0x156   : > { %527 = vmax.xlane.f32.xlu0 %v505_v22  ;;  %v723_v22 = vsub.s32 %v1368_v6, %v1352_v60 }
 0x157   : > { %587 = vadd.xlane.f32.xlu1 %v559_v21  ;;  %v692_v21 = vadd.s32 4294967240, %v1350_v57 }
 0x15a   : > { %523 = vmax.xlane.f32.xlu0 %v503_v25 }
 0x15b   : > { %591 = vadd.xlane.f32.xlu1 %v561_v26  ;;  %v688_v26 = vsub.s32 %v1376_v11, %v1352_v60  ;;  %v737_v11 = vsub.s32 %v734_v54, %v1352_v60 }
 0x15e   : > { %529 = vmax.xlane.f32.xlu0 %v506_v28  ;;  %v678_v28 = vadd.s32 4294967256, %v1350_v57 }
 0x15f   : > { %577 = vadd.xlane.f32.xlu1 %v554_v29 }
 0x162   : > { %525 = vmax.xlane.f32.xlu0 %v504_v31  ;;  %v674_v31 = vsub.s32 %v671_v16, %v1352_v60 }
 0x163   : > { %573 = vadd.xlane.f32.xlu1 %v552_v30 }
 0x166   : > { %539 = vmax.xlane.f32.xlu0 %v511_v34  ;;  %v695_v34 = vsub.s32 %v692_v21, %v1352_v60 }
 0x167   : > { %593 = vadd.xlane.f32.xlu1 %v562_v35  ;;  %v1400_v35 = vadd.s32 4294967200, %v1350_v57 }
 0x16a   : > { %541 = vmax.xlane.f32.xlu0 %v512_v37 }
 0x16b   : > { %589 = vadd.xlane.f32.xlu1 %v560_v36 }
 0x16e   : > { %543 = vmax.xlane.f32.xlu0 %v513_v38 }
 0x16f   : > { %545 = vmax.xlane.f32.xlu1 %v514_v39 }
 0x1bf   : > { %v1330_v40 = vpop.xlane.xlu0 %519 }
 0x1c0   : > { %v568_v41 = vpop.xlane.xlu1 %567 }
 0x1c1   : > { %v598_v13 = vmul.f32 0.0078125, %v568_v41  ;;  %v681_v41 = vsub.s32 %v678_v28, %v1352_v60 }
 0x1c3   : > { %v1332_v42 = vpop.xlane.xlu0 %535  ;;  %v614_v29 = vsub.f32 %v1330_v40, %v598_v13 }
 0x1c4   : > { %v516_v43 = vpop.xlane.xlu1 %515 }
 0x1c7   : > { %v1334_v44 = vpop.xlane.xlu0 %531 }
 0x1c8   : > { %v1336_v45 = vpop.xlane.xlu1 %583 }
 0x1c9   : > { %v606_v61 = vmul.f32 0.0078125, %v1336_v45  ;;  %v741_v45 = vadd.s32 4294967184, %v1350_v57 }
 0x1cb   : > { %v564_v46 = vpop.xlane.xlu0 %563 }
 0x1cc   : > { %v1338_v47 = vpop.xlane.xlu1 %579  ;;  %v596_v3 = vmul.f32 0.0078125, %v564_v46 }
 0x1cd   : > { %v604_v46 = vmul.f32 0.0078125, %v1338_v47 }
 0x1ce   : > { %v612_v18 = vsub.f32 %v516_v43, %v596_v3  ;;  %v661_v43 = vrot.slane %v614_v29, %v660_v8 }
 0x1cf   : > { %v1340_v48 = vpop.xlane.xlu0 %521 }
 0x1d0   : > { %v570_v49 = vpop.xlane.xlu1 %569  ;;  %v649_v33 = vrot.slane %v612_v18, %v648_v15  ;;  %v748_v15 = vadd.s32 4294967176, %v1350_v57 }
 0x1d1   : > { %v599_v24 = vmul.f32 0.0078125, %v570_v49 }
 0x1d3   : > { %v1342_v50 = vpop.xlane.xlu0 %537  ;;  %v615_v37 = vsub.f32 %v1340_v48, %v599_v24  ;;  %v730_v48 = vsub.s32 %v1400_v35, %v1352_v60 }
 0x1d4   : > { %v1344_v51 = vpop.xlane.xlu1 %585 }
 0x1d5   : > { %v668_v5 = vrot.slane %v615_v37, %v667_v20  ;;  %v607_v47 = vmul.f32 0.0078125, %v1344_v51  ;;  %v622_v51 = vsub.f32 %v1332_v42, %v606_v61 }
 0x1d7   : > { %v518_v52 = vpop.xlane.xlu0 %517  ;;  %v623_v20 = vsub.f32 %v1342_v50, %v607_v47  ;;  %v717_v29 = vrot.slane %v622_v51, %v716_v14 }
 0x1d8   : > { %v1346_v53 = vpop.xlane.xlu1 %581 }
 0x1d9   : > { %v724_v7 = vrot.slane %v623_v20, %v723_v22 }
 0x1db   : > { %v1348_v55 = vpop.xlane.xlu0 %533 }
 0x1dc   : > { %v576_v56 = vpop.xlane.xlu1 %575 }
 0x1dd   : > { %v602_v49 = vmul.f32 0.0078125, %v576_v56 }
 0x1df   : > { %v566_v58 = vpop.xlane.xlu0 %565 }
 0x1e0   : > { %v572_v59 = vpop.xlane.xlu1 %571  ;;  %v597_v63 = vmul.f32 0.0078125, %v566_v58  ;;  %v605_v58 = vmul.f32 0.0078125, %v1346_v53  ;;  %v620_v53 = vsub.f32 %v1334_v44, %v604_v46 }
 0x1e1   : > { %v600_v30 = vmul.f32 0.0078125, %v572_v59 }
 0x1e2   : > { %v613_v10 = vsub.f32 %v518_v52, %v597_v63 }
 0x1e3   : > { %v1356_v0 = vpop.xlane.xlu0 %527 }
 0x1e4   : > { %v1361_v2 = vpop.xlane.xlu1 %587  ;;  %v654_v25 = vrot.slane %v613_v10, %v653_v9  ;;  %v618_v63 = vsub.f32 %v1356_v0, %v602_v49 }
 0x1e5   : > { %v608_v18 = vmul.f32 0.0078125, %v1361_v2  ;;  %v744_v2 = vsub.s32 %v741_v45, %v1352_v60 }
 0x1e6   : > { %v656_v38 = vsel %vm655_vm1, %v654_v25, %v649_v33  ;;  %v689_v16 = vrot.slane %v618_v63, %v688_v26 }
 0x1e7   : > { %v524_v12 = vpop.xlane.xlu0 %523  ;;  %v663_v62 = vsel %vm662_vm2, %v661_v43, %v656_v38 }
 0x1e8   : > { %v1383_v17 = vpop.xlane.xlu1 %591  ;;  %v616_v36 = vsub.f32 %v524_v12, %v600_v30  ;;  %v621_v12 = vsub.f32 %v1348_v55, %v605_v58  ;;  %v670_v0 = vsel %vm669_vm3, %v668_v5, %v663_v62  ;;  %v703_v55 = vrot.slane %v620_v53, %v702_v19 }
 0x1e9   : > { %v610_v4 = vmul.f32 0.0078125, %v1383_v17  ;;  %v751_v30 = vsub.s32 %v748_v15, %v1352_v60 }
 0x1ea   : > { %v675_v3 = vrot.slane %v616_v36, %v674_v31  ;;  %v710_v50 = vrot.slane %v621_v12, %v709_v23 }
 0x1eb   : > { %v530_v27 = vpop.xlane.xlu0 %529 }
 0x1ec   : > { %v578_v32 = vpop.xlane.xlu1 %577  ;;  %v677_v44 = vsel %vm676_vm4, %v675_v3, %v670_v0 }
 0x1ed   : > { %v603_v39 = vmul.f32 0.0078125, %v578_v32 }
 0x1ef   : > { %v526_v40 = vpop.xlane.xlu0 %525  ;;  %v619_v56 = vsub.f32 %v530_v27, %v603_v39 }
 0x1f0   : > { %v574_v52 = vpop.xlane.xlu1 %573 }
 0x1f1   : > { %v601_v59 = vmul.f32 0.0078125, %v574_v52  ;;  %v696_v21 = vrot.slane %v619_v56, %v695_v34 }
 0x1f3   : > { %v617_v8 = vsub.f32 %v526_v40, %v601_v59  ;;  %v540_v9 = vpop.xlane.xlu0 %539 }
 0x1f4   : > { %v594_v10 = vpop.xlane.xlu1 %593  ;;  %v624_v42 = vsub.f32 %v540_v9, %v608_v18 }
 0x1f5   : > { %v682_v13 = vrot.slane %v617_v8, %v681_v41  ;;  %v611_v31 = vmul.f32 0.0078125, %v594_v10 }
 0x1f6   : > { %v731_v14 = vrot.slane %v624_v42, %v730_v48 }
 0x1f7   : > { %v684_v24 = vsel %vm683_vm5, %v682_v13, %v677_v44  ;;  %v542_v25 = vpop.xlane.xlu0 %541 }
 0x1f8   : > { %v691_v57 = vsel %vm690_vm6, %v689_v16, %v684_v24  ;;  %v590_v26 = vpop.xlane.xlu1 %589 }
 0x1f9   : > { %v698_v27 = vsel %vm697_vm7, %v696_v21, %v691_v57  ;;  %v609_v28 = vmul.f32 0.0078125, %v590_v26 }
 0x1fa   : > { %v705_v19 = vsel %vm704_vm8, %v703_v55, %v698_v27 }
 0x1fb   : > { %v712_v23 = vsel %vm711_vm9, %v710_v50, %v705_v19  ;;  %v625_v32 = vsub.f32 %v542_v25, %v609_v28  ;;  %v544_v33 = vpop.xlane.xlu0 %543 }
 0x1fc   : > { %v719_v1 = vsel %vm718_vm10, %v717_v29, %v712_v23  ;;  %v626_v34 = vsub.f32 %v544_v33, %v610_v4  ;;  %v546_v17 = vpop.xlane.xlu1 %545 }
 0x1fd   : > { %v726_v35 = vsel %vm725_vm11, %v724_v7, %v719_v1  ;;  %v738_v36 = vrot.slane %v625_v32, %v737_v11  ;;  %v627_v37 = vsub.f32 %v546_v17, %v611_v31 }
 0x1fe   : > { %v733_v60 = vsel %vm732_vm12, %v731_v14, %v726_v35  ;;  %v745_v6 = vrot.slane %v626_v34, %v744_v2 }
 0x1ff   : > { %v752_v22 = vrot.slane %v627_v37, %v751_v30  ;;  %v740_v38 = vsel %vm739_vm13, %v738_v36, %v733_v60 }
 0x200   : > { %v747_v39 = vsel %vm746_vm14, %v745_v6, %v740_v38 }
 0x201   : > { %v754_v40 = vsel %vm753_vm15, %v752_v22, %v747_v39 }
 0x202   : > { %756 = vst [vmem:[%s218_s8] sm:$0x1] %v754_v40 }
 0x203   : > { %1055 = shalt.err (!%p1052_p5)
}
 0x204   : > { %s1056_s27 = scalar_lea.hbm %s1454_s18, 16  ;;  %s1060_s30 = scalar_lea.hbm %s1506_s3, 64 }
 0x205   : > { %p1057_p6 = scmp.ne.s32.totalorder %s1454_s18, %s1056_s27  ;;  %p1061_p10 = scmp.lt.u32.totalorder %s1454_s18, %s1506_s3 }
 0x206   : > { %p1062_p11 = scmp.lt.u32.totalorder %s1060_s30, %s1056_s27  ;;  %p1064_p13 = scmp.lt.u32.totalorder %s1056_s27, %s1454_s18 }
 0x207   : > { %p1058_p7 = pnand %p1057_p6, %p1183_p4 }
 0x208   : > { %p1063_p12 = por %p1062_p11, %p1061_p10 }
 0x209   : > { %p1059_p9 = pneg %p1058_p7 }
 0x20a   : > { %p1065_p0 = por %p1064_p13, %p1063_p12 }
 0x20c   : > { %p1066_p1 = pnand %p1065_p0, %p1059_p9 }
 0x20e   : > { %1069 = shalt.err (!%p1066_p1)
}
 0x20f   : > { %979 = dma.vmem_to_hbm [thread:$0]  (%p1183_p4), %s1456_s9, 16, %s1454_s18, %s758_s15  }
 0x210 PF: > { %p985_p2 = scmp.ge.s32.totalorder %s1120_s17, 2  ;;  %s783_s6 = sand.u32 1, %s1100_s12  }
 0x211   : > { %s784_s7 = scalar_lea.sflag [#allocation3], %s783_s6 }
 0x212   : > { %p982_p3 = pnand %p985_p2, %p1190_p8 }
 0x214   : > { %1095 = dma.done.wait (!%p982_p3), %s784_s7, 16  }
 0x215   : > { %1097 = vsyncadd (!%p982_p3), %s784_s7, 4294967280  ;;  %s16_s17 = sadd.s32 1, %s1120_s17   ;;  %s1509_s12 = smov %s1104_s13 }
 0x216   : > { %p13_p5 = scmp.ge.s32.totalorder %s16_s17, 6   ;;  %s1510_s13 = smov %s1108_s14 }
 0x217   : > { %s1511_s14 = smov %s1196_s25  ;;  %s1512_s15 = smov %s1116_s16 }
 0x218   : > { %s1513_s16 = smov %s1515_s20  ;;  %15 = sbr.rel (!%p13_p5) target bundleno = 4 (0x4), region = 73 }
 0x21f   :  { %788 = vsyncpa [#allocation3], 1 }
 0x220   :  { %790 = vsyncpa [#allocation3 + $0x1], 1 }

</bundles_post_ra>
